<compile_context>
chip_gen: v5e
topology: v5e:2x2
jax: 0.10.0
libtpu: 0.0.40
codegen_flags: <defaults>
</compile_context>

<pallas_src>
import functools

import jax
import jax.numpy as jnp
from jax.experimental import pallas as pl
from jax.experimental.pallas import tpu as pltpu


def _mlp_kernel(x_ref,
                w1_ref, b1_ref,
                w2_ref, b2_ref,
                w3_ref, b3_ref,
                w4_ref, b4_ref,
                w5_ref, b5_ref,
                w6_ref, b6_ref,
                o_ref):
    h = x_ref[...]  # (input_size, TILE_B) bf16, batch on the lane axis

    def dense_relu_mxu(h_act, w_ref, b_ref):
        # (out, in) bf16 @ (in, TILE_B) bf16 -> (out, TILE_B) f32 on the MXU
        # (result N = TILE_B fills all lanes); bias + ReLU in f32 on the VPU.
        y = jnp.dot(w_ref[...], h_act.astype(jnp.bfloat16),
                    preferred_element_type=jnp.float32)
        return jnp.maximum(y + b_ref[...], 0.0)

    h = dense_relu_mxu(h, w1_ref, b1_ref)    # encoding_hidden_layer1 -> (64, B)
    h = dense_relu_mxu(h, w2_ref, b2_ref)    # encoding_hidden_layer2 -> (32, B)
    h = dense_relu_mxu(h, w3_ref, b3_ref)    # core_hidden_layer      -> (3,  B)

    # decoding_hidden_layer2: K=3 contraction as 3 VPU broadcast-FMAs in f32
    # (outer products), bypassing an MXU round-trip.
    w4 = w4_ref[...]                          # (32, 3) f32
    y4 = (w4[:, 0:1] * h[0:1, :]
          + w4[:, 1:2] * h[1:2, :]
          + w4[:, 2:3] * h[2:3, :]
          + b4_ref[...])
    h = jnp.maximum(y4, 0.0)                  # (32, B)

    h = dense_relu_mxu(h, w5_ref, b5_ref)     # decoding_hidden_layer1 -> (64, B)
    h = dense_relu_mxu(h, w6_ref, b6_ref)     # output_layer (ReLU'd)  -> (out, B)

    o_ref[...] = h.astype(o_ref.dtype)


def _choose_tile(batch, tile_b, min_grid_steps):
    """Pick a 128-aligned batch tile: as large as requested, but small enough to
    keep >= min_grid_steps grid steps when the batch allows (v7x megacore)."""
    aligned_batch = pl.cdiv(batch, 128) * 128
    cap = max(128, (aligned_batch // min_grid_steps) // 128 * 128)
    return max(128, min(tile_b, cap, aligned_batch))


def rotation_strategy_autoencoder(features, params, *, tile_b=1024,
                                  min_grid_steps=8):
    """features: (batch, input_size) f32.
    params: list of (W, b) in nn.Linear layout, W: (out, in), b: (out,)."""
    batch, input_size = features.shape
    output_size = params[-1][0].shape[0]

    tb = _choose_tile(batch, tile_b, min_grid_steps)
    num_tiles = pl.cdiv(batch, tb)
    padded_batch = num_tiles * tb

    # Feature-major, bf16 input slab (cast + transpose + pad fuse under jit).
    feat_t = features.astype(jnp.bfloat16).T            # (input_size, batch)
    if padded_batch != batch:
        feat_t = jnp.pad(feat_t, ((0, 0), (0, padded_batch - batch)))

    # Weight prep: bf16 for MXU layers, f32 for the K=3 VPU layer; biases f32
    # reshaped to (out, 1) so they lane-broadcast over the batch.
    flat_args = [feat_t]
    for idx, (w, b) in enumerate(params):
        w_cast = w.astype(jnp.float32) if idx == 3 else w.astype(jnp.bfloat16)
        flat_args.append(w_cast)
        flat_args.append(b.reshape(w.shape[0], 1).astype(jnp.float32))

    # BlockSpecs: tile only the batch (lane) axis; params are grid-invariant.
    x_spec = pl.BlockSpec((input_size, tb), lambda i: (0, i))
    param_specs = []
    for w, _ in params:
        param_specs.append(pl.BlockSpec(w.shape, lambda i: (0, 0)))
        param_specs.append(pl.BlockSpec((w.shape[0], 1), lambda i: (0, 0)))
    out_spec = pl.BlockSpec((output_size, tb), lambda i: (0, i))

    # Advisory cost estimate.
    layer_dims = [(w.shape[1], w.shape[0]) for w, _ in params]  # (in, out)
    flops = 2 * padded_batch * sum(fi * fo for fi, fo in layer_dims)
    weight_bytes = sum(
        w.size * (4 if i == 3 else 2) + w.shape[0] * 4
        for i, (w, _) in enumerate(params))
    bytes_accessed = (padded_batch * input_size * 2          # bf16 input
                      + padded_batch * output_size * 4       # f32 output
                      + weight_bytes)
    cost = pl.CostEstimate(flops=int(flops), transcendentals=0,
                           bytes_accessed=int(bytes_accessed))

    # VMEM limit from the actual footprint (double-buffered x/o streams,
    # resident params, live f32 intermediates) plus generous headroom.
    footprint = (2 * input_size * tb * 2          # x tile, double-buffered bf16
                 + 2 * output_size * tb * 4       # out tile, double-buffered f32
                 + weight_bytes
                 + 2 * 64 * tb * 4)               # two live (64, TILE_B) f32 acts
    vmem_limit = min(48 * 1024 * 1024, max(8 * 1024 * 1024, 4 * footprint))

    out_t = pl.pallas_call(
        _mlp_kernel,
        out_shape=jax.ShapeDtypeStruct((output_size, padded_batch), jnp.float32),
        grid=(num_tiles,),
        in_specs=[x_spec] + param_specs,
        out_specs=out_spec,
        compiler_params=pltpu.CompilerParams(
            dimension_semantics=("parallel",),
            vmem_limit_bytes=int(vmem_limit),
        ),
        cost_estimate=cost,
    )(*flat_args)

    return out_t.T[:batch]


def init_params(key, input_size, output_size):
    """Deterministic init mirroring nn.Linear: W (out, in), b (out,)."""
    layer_dims = [(input_size, 64), (64, 32), (32, 3),
                  (3, 32), (32, 64), (64, output_size)]
    params = []
    for fan_in, fan_out in layer_dims:
        key, kw, kb = jax.random.split(key, 3)
        bound = 1.0 / jnp.sqrt(jnp.float32(fan_in))
        w = jax.random.uniform(kw, (fan_out, fan_in), jnp.float32, -bound, bound)
        b = jax.random.uniform(kb, (fan_out,), jnp.float32, -bound, bound)
        params.append((w, b))
    return params


def reference_forward(features, params):
    """Pure-f32 reference matching the PyTorch forward (incl. final ReLU)."""
    h = features
    for w, b in params:
        h = jnp.maximum(h @ w.T + b, 0.0)
    return h


if __name__ == "__main__":
    key = jax.random.PRNGKey(0)
    batch, input_size, output_size = 2048, 16, 16   # -> 8 grid steps of 256 rows

    key, kx = jax.random.split(key)
    x = jax.random.normal(kx, (batch, input_size), jnp.float32)
    params = init_params(key, input_size, output_size)

    run = jax.jit(functools.partial(rotation_strategy_autoencoder,
                                    tile_b=1024, min_grid_steps=8))
    out = jax.block_until_ready(run(x, params))

    ref = reference_forward(x, params)
    assert out.shape == (batch, output_size)
    # bf16 MXU inputs (f32 accumulation) vs. pure-f32 reference through the
    # 6-layer chain -> compare at bf16-consistent tolerance.
    max_err = float(jnp.max(jnp.abs(out - ref)))
    assert jnp.allclose(out, ref, atol=5e-2, rtol=5e-2), max_err

    print("KERNEL_OK")
</pallas_src>

<mosaic_0001>
module attributes {stable_mosaic.version = 11 : i64} {
  func.func @_mlp_kernel(%arg0: i32, %arg1: memref<16x256xbf16, #tpu.memory_space<vmem>>, %arg2: memref<64x16xbf16, #tpu.memory_space<vmem>>, %arg3: memref<64x1xf32, #tpu.memory_space<vmem>>, %arg4: memref<32x64xbf16, #tpu.memory_space<vmem>>, %arg5: memref<32x1xf32, #tpu.memory_space<vmem>>, %arg6: memref<3x32xbf16, #tpu.memory_space<vmem>>, %arg7: memref<3x1xf32, #tpu.memory_space<vmem>>, %arg8: memref<32x3xf32, #tpu.memory_space<vmem>>, %arg9: memref<32x1xf32, #tpu.memory_space<vmem>>, %arg10: memref<64x32xbf16, #tpu.memory_space<vmem>>, %arg11: memref<64x1xf32, #tpu.memory_space<vmem>>, %arg12: memref<16x64xbf16, #tpu.memory_space<vmem>>, %arg13: memref<16x1xf32, #tpu.memory_space<vmem>>, %arg14: memref<16x256xf32, #tpu.memory_space<vmem>>) attributes {dimension_semantics = [#tpu.dimension_semantics<parallel>], iteration_bounds = array<i64: 8>, scalar_prefetch = 0 : i64, scratch_operands = 0 : i64, tpu.core_type = #tpu.core_type<tc>, window_params = [{transform_indices = @transform_0, window_bounds = array<i64: 16, 256>}, {pipeline_mode = #tpu.pipeline_mode<synchronous>, transform_indices = @transform_1, window_bounds = array<i64: 64, 16>}, {pipeline_mode = #tpu.pipeline_mode<synchronous>, transform_indices = @transform_2, window_bounds = array<i64: 64, 1>}, {pipeline_mode = #tpu.pipeline_mode<synchronous>, transform_indices = @transform_3, window_bounds = array<i64: 32, 64>}, {pipeline_mode = #tpu.pipeline_mode<synchronous>, transform_indices = @transform_4, window_bounds = array<i64: 32, 1>}, {pipeline_mode = #tpu.pipeline_mode<synchronous>, transform_indices = @transform_5, window_bounds = array<i64: 3, 32>}, {pipeline_mode = #tpu.pipeline_mode<synchronous>, transform_indices = @transform_6, window_bounds = array<i64: 3, 1>}, {pipeline_mode = #tpu.pipeline_mode<synchronous>, transform_indices = @transform_7, window_bounds = array<i64: 32, 3>}, {pipeline_mode = #tpu.pipeline_mode<synchronous>, transform_indices = @transform_8, window_bounds = array<i64: 32, 1>}, {pipeline_mode = #tpu.pipeline_mode<synchronous>, transform_indices = @transform_9, window_bounds = array<i64: 64, 32>}, {pipeline_mode = #tpu.pipeline_mode<synchronous>, transform_indices = @transform_10, window_bounds = array<i64: 64, 1>}, {pipeline_mode = #tpu.pipeline_mode<synchronous>, transform_indices = @transform_11, window_bounds = array<i64: 16, 64>}, {pipeline_mode = #tpu.pipeline_mode<synchronous>, transform_indices = @transform_12, window_bounds = array<i64: 16, 1>}, {transform_indices = @transform_13, window_bounds = array<i64: 16, 256>}]} {
    %c0 = arith.constant 0 : index
    %c0_0 = arith.constant 0 : index
    %0 = vector.load %arg1[%c0, %c0_0] : memref<16x256xbf16, #tpu.memory_space<vmem>>, vector<16x256xbf16>
    %c0_1 = arith.constant 0 : index
    %c0_2 = arith.constant 0 : index
    %1 = vector.load %arg2[%c0_1, %c0_2] : memref<64x16xbf16, #tpu.memory_space<vmem>>, vector<64x16xbf16>
    %cst = arith.constant dense<0.000000e+00> : vector<64x256xf32>
    %2 = tpu.matmul %1, %0, %cst {dimension_numbers = #tpu.dot_dimension_numbers<[1], [0], [0], [1], [0, 0, 1, 1], [], []>} : vector<64x16xbf16>, vector<16x256xbf16>, vector<64x256xf32> -> vector<64x256xf32>
    %c0_3 = arith.constant 0 : index
    %c0_4 = arith.constant 0 : index
    %3 = vector.load %arg3[%c0_3, %c0_4] : memref<64x1xf32, #tpu.memory_space<vmem>>, vector<64x1xf32>
    %4 = vector.broadcast %3 : vector<64x1xf32> to vector<64x256xf32>
    %5 = arith.addf %2, %4 : vector<64x256xf32>
    %cst_5 = arith.constant 0.000000e+00 : f32
    %6 = vector.broadcast %cst_5 : f32 to vector<64x256xf32>
    %7 = arith.maximumf %5, %6 : vector<64x256xf32>
    %c0_6 = arith.constant 0 : index
    %c0_7 = arith.constant 0 : index
    %8 = vector.load %arg4[%c0_6, %c0_7] : memref<32x64xbf16, #tpu.memory_space<vmem>>, vector<32x64xbf16>
    %9 = arith.truncf %7 : vector<64x256xf32> to vector<64x256xbf16>
    %cst_8 = arith.constant dense<0.000000e+00> : vector<32x256xf32>
    %10 = tpu.matmul %8, %9, %cst_8 {dimension_numbers = #tpu.dot_dimension_numbers<[1], [0], [0], [1], [0, 0, 1, 1], [], []>} : vector<32x64xbf16>, vector<64x256xbf16>, vector<32x256xf32> -> vector<32x256xf32>
    %c0_9 = arith.constant 0 : index
    %c0_10 = arith.constant 0 : index
    %11 = vector.load %arg5[%c0_9, %c0_10] : memref<32x1xf32, #tpu.memory_space<vmem>>, vector<32x1xf32>
    %12 = vector.broadcast %11 : vector<32x1xf32> to vector<32x256xf32>
    %13 = arith.addf %10, %12 : vector<32x256xf32>
    %cst_11 = arith.constant 0.000000e+00 : f32
    %14 = vector.broadcast %cst_11 : f32 to vector<32x256xf32>
    %15 = arith.maximumf %13, %14 : vector<32x256xf32>
    %c0_12 = arith.constant 0 : index
    %c0_13 = arith.constant 0 : index
    %16 = vector.load %arg6[%c0_12, %c0_13] : memref<3x32xbf16, #tpu.memory_space<vmem>>, vector<3x32xbf16>
    %17 = arith.truncf %15 : vector<32x256xf32> to vector<32x256xbf16>
    %cst_14 = arith.constant dense<0.000000e+00> : vector<3x256xf32>
    %18 = tpu.matmul %16, %17, %cst_14 {dimension_numbers = #tpu.dot_dimension_numbers<[1], [0], [0], [1], [0, 0, 1, 1], [], []>} : vector<3x32xbf16>, vector<32x256xbf16>, vector<3x256xf32> -> vector<3x256xf32>
    %c0_15 = arith.constant 0 : index
    %c0_16 = arith.constant 0 : index
    %19 = vector.load %arg7[%c0_15, %c0_16] : memref<3x1xf32, #tpu.memory_space<vmem>>, vector<3x1xf32>
    %20 = vector.broadcast %19 : vector<3x1xf32> to vector<3x256xf32>
    %21 = arith.addf %18, %20 : vector<3x256xf32>
    %cst_17 = arith.constant 0.000000e+00 : f32
    %22 = vector.broadcast %cst_17 : f32 to vector<3x256xf32>
    %23 = arith.maximumf %21, %22 : vector<3x256xf32>
    %c0_18 = arith.constant 0 : index
    %c0_19 = arith.constant 0 : index
    %24 = vector.load %arg8[%c0_18, %c0_19] : memref<32x3xf32, #tpu.memory_space<vmem>>, vector<32x3xf32>
    %25 = vector.extract_strided_slice %24 {offsets = [0, 0], sizes = [32, 1], strides = [1, 1]} : vector<32x3xf32> to vector<32x1xf32>
    %26 = vector.extract_strided_slice %23 {offsets = [0, 0], sizes = [1, 256], strides = [1, 1]} : vector<3x256xf32> to vector<1x256xf32>
    %27 = vector.broadcast %25 : vector<32x1xf32> to vector<32x256xf32>
    %28 = vector.broadcast %26 : vector<1x256xf32> to vector<32x256xf32>
    %29 = arith.mulf %27, %28 : vector<32x256xf32>
    %30 = vector.extract_strided_slice %24 {offsets = [0, 1], sizes = [32, 1], strides = [1, 1]} : vector<32x3xf32> to vector<32x1xf32>
    %31 = vector.extract_strided_slice %23 {offsets = [1, 0], sizes = [1, 256], strides = [1, 1]} : vector<3x256xf32> to vector<1x256xf32>
    %32 = vector.broadcast %30 : vector<32x1xf32> to vector<32x256xf32>
    %33 = vector.broadcast %31 : vector<1x256xf32> to vector<32x256xf32>
    %34 = arith.mulf %32, %33 : vector<32x256xf32>
    %35 = arith.addf %29, %34 : vector<32x256xf32>
    %36 = vector.extract_strided_slice %24 {offsets = [0, 2], sizes = [32, 1], strides = [1, 1]} : vector<32x3xf32> to vector<32x1xf32>
    %37 = vector.extract_strided_slice %23 {offsets = [2, 0], sizes = [1, 256], strides = [1, 1]} : vector<3x256xf32> to vector<1x256xf32>
    %38 = vector.broadcast %36 : vector<32x1xf32> to vector<32x256xf32>
    %39 = vector.broadcast %37 : vector<1x256xf32> to vector<32x256xf32>
    %40 = arith.mulf %38, %39 : vector<32x256xf32>
    %41 = arith.addf %35, %40 : vector<32x256xf32>
    %c0_20 = arith.constant 0 : index
    %c0_21 = arith.constant 0 : index
    %42 = vector.load %arg9[%c0_20, %c0_21] : memref<32x1xf32, #tpu.memory_space<vmem>>, vector<32x1xf32>
    %43 = vector.broadcast %42 : vector<32x1xf32> to vector<32x256xf32>
    %44 = arith.addf %41, %43 : vector<32x256xf32>
    %cst_22 = arith.constant 0.000000e+00 : f32
    %45 = vector.broadcast %cst_22 : f32 to vector<32x256xf32>
    %46 = arith.maximumf %44, %45 : vector<32x256xf32>
    %c0_23 = arith.constant 0 : index
    %c0_24 = arith.constant 0 : index
    %47 = vector.load %arg10[%c0_23, %c0_24] : memref<64x32xbf16, #tpu.memory_space<vmem>>, vector<64x32xbf16>
    %48 = arith.truncf %46 : vector<32x256xf32> to vector<32x256xbf16>
    %cst_25 = arith.constant dense<0.000000e+00> : vector<64x256xf32>
    %49 = tpu.matmul %47, %48, %cst_25 {dimension_numbers = #tpu.dot_dimension_numbers<[1], [0], [0], [1], [0, 0, 1, 1], [], []>} : vector<64x32xbf16>, vector<32x256xbf16>, vector<64x256xf32> -> vector<64x256xf32>
    %c0_26 = arith.constant 0 : index
    %c0_27 = arith.constant 0 : index
    %50 = vector.load %arg11[%c0_26, %c0_27] : memref<64x1xf32, #tpu.memory_space<vmem>>, vector<64x1xf32>
    %51 = vector.broadcast %50 : vector<64x1xf32> to vector<64x256xf32>
    %52 = arith.addf %49, %51 : vector<64x256xf32>
    %cst_28 = arith.constant 0.000000e+00 : f32
    %53 = vector.broadcast %cst_28 : f32 to vector<64x256xf32>
    %54 = arith.maximumf %52, %53 : vector<64x256xf32>
    %c0_29 = arith.constant 0 : index
    %c0_30 = arith.constant 0 : index
    %55 = vector.load %arg12[%c0_29, %c0_30] : memref<16x64xbf16, #tpu.memory_space<vmem>>, vector<16x64xbf16>
    %56 = arith.truncf %54 : vector<64x256xf32> to vector<64x256xbf16>
    %cst_31 = arith.constant dense<0.000000e+00> : vector<16x256xf32>
    %57 = tpu.matmul %55, %56, %cst_31 {dimension_numbers = #tpu.dot_dimension_numbers<[1], [0], [0], [1], [0, 0, 1, 1], [], []>} : vector<16x64xbf16>, vector<64x256xbf16>, vector<16x256xf32> -> vector<16x256xf32>
    %c0_32 = arith.constant 0 : index
    %c0_33 = arith.constant 0 : index
    %58 = vector.load %arg13[%c0_32, %c0_33] : memref<16x1xf32, #tpu.memory_space<vmem>>, vector<16x1xf32>
    %59 = vector.broadcast %58 : vector<16x1xf32> to vector<16x256xf32>
    %60 = arith.addf %57, %59 : vector<16x256xf32>
    %cst_34 = arith.constant 0.000000e+00 : f32
    %61 = vector.broadcast %cst_34 : f32 to vector<16x256xf32>
    %62 = arith.maximumf %60, %61 : vector<16x256xf32>
    %c0_35 = arith.constant 0 : index
    %c0_36 = arith.constant 0 : index
    %63 = vector.load %arg14[%c0_35, %c0_36] : memref<16x256xf32, #tpu.memory_space<vmem>>, vector<16x256xf32>
    tpu.vector_store %arg14[%c0_35, %c0_36], %62 {strides = array<i32>} : memref<16x256xf32, #tpu.memory_space<vmem>>, vector<16x256xf32>,
    return
  }
  func.func @transform_0(%arg0: i32) -> (i32, i32) {
    %c0_i32 = arith.constant 0 : i32
    %c0_i32_0 = arith.constant 0 : i32
    return %c0_i32, %arg0 : i32, i32
  }
  func.func @transform_1(%arg0: i32) -> (i32, i32) {
    %c0_i32 = arith.constant 0 : i32
    %c0_i32_0 = arith.constant 0 : i32
    %c0_i32_1 = arith.constant 0 : i32
    return %c0_i32, %c0_i32_0 : i32, i32
  }
  func.func @transform_2(%arg0: i32) -> (i32, i32) {
    %c0_i32 = arith.constant 0 : i32
    %c0_i32_0 = arith.constant 0 : i32
    %c0_i32_1 = arith.constant 0 : i32
    return %c0_i32, %c0_i32_0 : i32, i32
  }
  func.func @transform_3(%arg0: i32) -> (i32, i32) {
    %c0_i32 = arith.constant 0 : i32
    %c0_i32_0 = arith.constant 0 : i32
    %c0_i32_1 = arith.constant 0 : i32
    return %c0_i32, %c0_i32_0 : i32, i32
  }
  func.func @transform_4(%arg0: i32) -> (i32, i32) {
    %c0_i32 = arith.constant 0 : i32
    %c0_i32_0 = arith.constant 0 : i32
    %c0_i32_1 = arith.constant 0 : i32
    return %c0_i32, %c0_i32_0 : i32, i32
  }
  func.func @transform_5(%arg0: i32) -> (i32, i32) {
    %c0_i32 = arith.constant 0 : i32
    %c0_i32_0 = arith.constant 0 : i32
    %c0_i32_1 = arith.constant 0 : i32
    return %c0_i32, %c0_i32_0 : i32, i32
  }
  func.func @transform_6(%arg0: i32) -> (i32, i32) {
    %c0_i32 = arith.constant 0 : i32
    %c0_i32_0 = arith.constant 0 : i32
    %c0_i32_1 = arith.constant 0 : i32
    return %c0_i32, %c0_i32_0 : i32, i32
  }
  func.func @transform_7(%arg0: i32) -> (i32, i32) {
    %c0_i32 = arith.constant 0 : i32
    %c0_i32_0 = arith.constant 0 : i32
    %c0_i32_1 = arith.constant 0 : i32
    return %c0_i32, %c0_i32_0 : i32, i32
  }
  func.func @transform_8(%arg0: i32) -> (i32, i32) {
    %c0_i32 = arith.constant 0 : i32
    %c0_i32_0 = arith.constant 0 : i32
    %c0_i32_1 = arith.constant 0 : i32
    return %c0_i32, %c0_i32_0 : i32, i32
  }
  func.func @transform_9(%arg0: i32) -> (i32, i32) {
    %c0_i32 = arith.constant 0 : i32
    %c0_i32_0 = arith.constant 0 : i32
    %c0_i32_1 = arith.constant 0 : i32
    return %c0_i32, %c0_i32_0 : i32, i32
  }
  func.func @transform_10(%arg0: i32) -> (i32, i32) {
    %c0_i32 = arith.constant 0 : i32
    %c0_i32_0 = arith.constant 0 : i32
    %c0_i32_1 = arith.constant 0 : i32
    return %c0_i32, %c0_i32_0 : i32, i32
  }
  func.func @transform_11(%arg0: i32) -> (i32, i32) {
    %c0_i32 = arith.constant 0 : i32
    %c0_i32_0 = arith.constant 0 : i32
    %c0_i32_1 = arith.constant 0 : i32
    return %c0_i32, %c0_i32_0 : i32, i32
  }
  func.func @transform_12(%arg0: i32) -> (i32, i32) {
    %c0_i32 = arith.constant 0 : i32
    %c0_i32_0 = arith.constant 0 : i32
    %c0_i32_1 = arith.constant 0 : i32
    return %c0_i32, %c0_i32_0 : i32, i32
  }
  func.func @transform_13(%arg0: i32) -> (i32, i32) {
    %c0_i32 = arith.constant 0 : i32
    %c0_i32_0 = arith.constant 0 : i32
    return %c0_i32, %arg0 : i32, i32
  }
}

</mosaic_0001>

<bundles_post_ra>
// kernel: rotation_strategy_autoencoder.1
= control target key start
LH: loop header
LB: loop body
LE: loop exit
PB: predicated region body
PF: predicated region fallthrough
CT: control target
= control target key end

     0   :  { %s1835_s0 = inlined_call_operand.vmem [shape: bf16[16,2048], index: 0, kind: input, shape index: {}]   ;;  %s1836_s1 = inlined_call_operand.vmem [shape: bf16[64,16], index: 1, kind: input, shape index: {}]   ;;  %s1837_s2 = inlined_call_operand.vmem [shape: f32[64,1], index: 2, kind: input, shape index: {}]   ;;  %s1838_s3 = inlined_call_operand.vmem [shape: bf16[32,64], index: 3, kind: input, shape index: {}]   ;;  %s1839_s4 = inlined_call_operand.vmem [shape: f32[32,1], index: 4, kind: input, shape index: {}]   ;;  %s1840_s5 = inlined_call_operand.vmem [shape: bf16[3,32], index: 5, kind: input, shape index: {}]   ;;  %s1841_s6 = inlined_call_operand.vmem [shape: f32[3,1], index: 6, kind: input, shape index: {}]   ;;  %s1842_s7 = inlined_call_operand.vmem [shape: f32[32,3], index: 7, kind: input, shape index: {}]   ;;  %s1843_s8 = inlined_call_operand.vmem [shape: f32[32,1], index: 8, kind: input, shape index: {}]   ;;  %s1844_s9 = inlined_call_operand.vmem [shape: bf16[64,32], index: 9, kind: input, shape index: {}]   ;;  %s1845_s10 = inlined_call_operand.vmem [shape: f32[64,1], index: 10, kind: input, shape index: {}]   ;;  %s1846_s11 = inlined_call_operand.vmem [shape: bf16[16,64], index: 11, kind: input, shape index: {}]   ;;  %s1847_s12 = inlined_call_operand.vmem [shape: f32[16,1], index: 12, kind: input, shape index: {}]   ;;  %s1848_s13 = inlined_call_operand.hbm [shape: f32[16,2048], index: 13, kind: output, shape index: {}]  }
   0x1   :  { %1850 = sst [smem:[#allocation7_spill]] %s1835_s0 }
   0x2   :  { %1851 = sst [smem:[#allocation8_spill]] %s1836_s1 }
   0x3   :  { %1852 = sst [smem:[#allocation9_spill]] %s1837_s2 }
   0x4   :  { %18 = vsyncpa [#allocation4], 0 }
   0x5   :  { %20 = vsyncpa [#allocation4 + $0x1], 0  ;;  %s1570_s25 = smov 0   ;;  %s1572_s26 = smov 0  }
   0x6   :  { %s1574_s27 = smov 0   ;;  %s1576_s28 = smov 0  }
   0x7 LB: > { %s1849_s29 = sadd.s32 4294967295, %s1492_s28   ;;  %s1257_s30 = sadd.s32 4294967294, %s1492_s28   ;;  %s1492_s28 = sphi %s1576_s28, %s1864_s28   ;;  %s1488_s27 = sphi %s1574_s27, %s1863_s27   ;;  %s1484_s26 = sphi %s1572_s26, %s1862_s26   ;;  %s1480_s25 = sphi %s1570_s25, %s1861_s25  }
   0x8   : > { %s1593_s14 = sadd.s32 1, %s1492_s28   ;;  %s33_s15 = sadd.s32 1, %s1488_s27 }
   0x9   : > { %s30_s16 = ssub.s32 %s1492_s28, %s1593_s14  ;;  %p40_p0 = scmp.ne.s32.totalorder %s1488_s27, %s1484_s26 }
   0xa   : > { %p31_p1 = scmp.eq.s32.totalorder %s30_s16, 0  ;;  %p41_p2 = scmp.eq.s32.totalorder %s1492_s28, 0 }
   0xb   : > { %p322_p3 = scmp.eq.s32.totalorder %s1849_s29, 7  ;;  %p327_p4 = scmp.ne.s32.totalorder %s1484_s26, %s1480_s25 }
   0xc   : > { %s1606_s17 = scalar_select %p31_p1, %s1488_s27, %s33_s15  }
   0xd   : > { %p42_p5 = por %p41_p2, %p40_p0  ;;  %p1608_p6 = por %p322_p3, %p40_p0 }
   0xe   : > { %1853 = sst [smem:[#allocation6_spill]] %s1606_s17  ;;  %p328_p7 = scmp.eq.s32.totalorder %s1257_s30, 7 }
   0xf   : > { %p1259_p9 = scmp.ge.s32.totalorder %s1492_s28, 8 }
  0x10   : > { %p1612_p8 = por %p328_p7, %p327_p4 }
  0x11   : > { %380 = sbr.rel (%p1259_p9) target bundleno = 34 (0x22), region = 64 }
  0x16   : > { %383 = sbr.rel (!%p42_p5) target bundleno = 34 (0x22), region = 68  ;;  %s385_s20 = sand.u32 (%p42_p5), 1, %s1488_s27  }
  0x17   : > { %s1347_s21 = sshll.u32 (%p42_p5), %s1492_s28, 3  ;;  %s1260_s22 = sshll.u32 (%p42_p5), %s385_s20, 4 }
  0x18   : > { %s1856_s0 = sld [smem:[#allocation7_spill]] (%p42_p5)  ;;  %s387_s30 = scalar_lea.vmem (%p42_p5), [#allocation2], %s1260_s22 }
  0x1e   : > { %s390_s15 = scalar_lea.vmem %s1856_s0, %s1347_s21 }
  0x1f   : > { %v421_v0 = vld [vmem:[%s390_s15] sm:$0xff] }
  0x20   : > { %v423_v1 = vld [vmem:[%s390_s15 + $0x40] sm:$0xff]  ;;  %422 = vst [vmem:[%s387_s30] sm:$0xff] %v421_v0 }
  0x21   : > { %424 = vst [vmem:[%s387_s30 + $0x8] sm:$0xff] %v423_v1 }
  0x22 PF: > { %p1263_p10 = scmp.ge.s32.totalorder %s1492_s28, 1  ;;  %p429_p11 = scmp.lt.s32.totalorder %s1492_s28, 9 }
  0x24   : > { %p430_p12 = pnand %p1263_p10, %p429_p11 }
  0x25   : > { %s1857_s2 = sld [smem:[#allocation9_spill]] (!%p430_p12)  ;;  %s1628_s20 = sand.u32 (!%p430_p12), 1, %s1484_s26  }
  0x26   : > { %433 = sbr.rel (%p430_p12) target bundleno = 920 (0x398), region = 106  ;;  %s1264_s21 = sshll.u32 (!%p430_p12), %s1628_s20, 4 }
  0x27   : > { %s438_s24 = scalar_lea.vmem (!%p430_p12), [#allocation2], %s1264_s21  ;;  %s1858_s1 = sld [smem:[#allocation8_spill]] (!%p430_p12) }
  0x28   : > { %s1265_s21 = sshll.u32 (!%p430_p12), %s1628_s20, 5  ;;  %s1859_s22 = sadd.s32 (!%p430_p12), 4294967295, %s1492_s28  }
  0x29   : > { %s1361_s23 = sshll.u32 (!%p430_p12), %s1859_s22, 4  ;;  %s1174_s16 = scalar_lea.sflag (!%p430_p12), [#allocation4], %s1628_s20 }
  0x2a   : > { %s1185_s17 = scalar_lea.hbm (!%p430_p12), %s1848_s13, %s1361_s23  ;;  %s1450_s0 = scalar_lea.hbm (!%p430_p12), %s1848_s13, 256 }
  0x2b   : > { %v498_v2 = vld [vmem:[%s1857_s2 + $0x30] sm:$0xff]  ;;  %v1494_v3 = vmov 0   ;;  %v496_v4 = vld [vmem:[%s1857_s2 + $0x20] sm:$0xff]  ;;  %v1349_v6 = vld [vmem:[%s438_s24 + $0x4] sm:$0xf0]  ;;  %vm570_vm0 = vcmask 130048  }
  0x2c   : > { %1415 = vset.pattern.permute.xlu0 %v1494_v3  ;;  %1416 = vset.pattern.permute.xlu1 %v1494_v3  ;;  %v1284_v5 = vld [vmem:[%s438_s24] sm:$0xf]  ;;  %v1348_v7 = vld [vmem:[%s438_s24 + $0x4] sm:$0xf]  ;;  %v1286_v9 = vld [vmem:[%s438_s24 + $0x8] sm:$0xf0] }
  0x2d   : > { %532 = vperm.xlu0 %1415, %v498_v2   ;;  %522 = vperm.xlu1 %1416, %v496_v4   ;;  %v1285_v8 = vor.u32 %v1349_v6, %v1284_v5  ;;  %v1289_v10 = vor.u32 %v1348_v7, %v1286_v9  ;;  %v1350_v11 = vld [vmem:[%s1858_s1] sm:$0xff]  ;;  %v499_v12 = vld [vmem:[%s1857_s2 + $0x38] sm:$0xff]  ;;  %v497_v13 = vld [vmem:[%s1857_s2 + $0x28] sm:$0xff]  ;;  %vm703_vm1 = vcmask 523264   ;;  %vm767_vm2 = vcmask 261120   ;;  %s478_s24 = scalar_lea.vmem [#allocation3], %s1265_s21 }
  0x2e   : > { %1417 = vset.pattern.permute.xlu2 %v1494_v3  ;;  %v492_v14 = vld [vmem:[%s1857_s2] sm:$0xff]  ;;  %v493_v15 = vld [vmem:[%s1857_s2 + $0x8] sm:$0xff]  ;;  %v494_v17 = vld [vmem:[%s1857_s2 + $0x10] sm:$0xff]  ;;  %s1186_s15 = sshll.u32 %s478_s24, 4  ;;  %s1804_s30 = sshll.u32 %s1185_s17, 4  ;;  %s1187_s15 = int_to_ptr.vmem [resolvable:$true] %s1186_s15  ;;  %s1189_s30 = int_to_ptr.hbm [resolvable:$true] %s1804_s30 }
  0x2f   : > { %590 = vmatpush.bf16.msra.mxu0 %v1285_v8  ;;  %619 = vmatpush.bf16.msra.mxu1 %v1289_v10  ;;  %v1351_v16 = vld [vmem:[%s1858_s1 + $0x8] sm:$0xff]  ;;  %v672_v18 = vld [vmem:[%s1839_s4 + $0x18] sm:$0xff]  ;;  %v669_v19 = vld [vmem:[%s1839_s4] sm:$0xff]  ;;  %s1444_s21 = sshra.s32 %s1189_s30, 4  ;;  %s1445_s21 = int_to_ptr.hbm [resolvable:$true] %s1444_s21 }
  0x30   : > { %512 = vperm.xlu2 %1417, %v494_v17   ;;  %v495_v20 = vld [vmem:[%s1857_s2 + $0x18] sm:$0xff]  ;;  %v1674_v21 = vld [vmem:[%s1842_s7 + $0x10] sm:$0xff]  ;;  %v670_v24 = vld [vmem:[%s1839_s4 + $0x8] sm:$0xff]  ;;  %s1446_s22 = scalar_lea.hbm %s1445_s21, 32  ;;  %p1451_p2 = scmp.lt.s32.totalorder %s1445_s21, %s1848_s13 }
  0x31   : > { %v1352_v22 = vld [vmem:[%s1858_s1 + $0x10] sm:$0xff]  ;;  %v1353_v25 = vld [vmem:[%s1858_s1 + $0x18] sm:$0xff]  ;;  %p1447_p13 = scmp.ne.s32.totalorder %s1445_s21, %s1446_s22  ;;  %p1452_p3 = scmp.lt.s32.totalorder %s1450_s0, %s1446_s22 }
  0x32   : > { %1290 = vmatmul.msk.bf16.vlgmr.msra.gmra.mxu0 %vm570_vm0, %v1350_v11  ;;  %1294 = vmatmul.msk.bf16.vlgmr.msra.gmra.mxu1 %vm570_vm0, %v1350_v11  ;;  %v671_v23 = vld [vmem:[%s1839_s4 + $0x10] sm:$0xff]  ;;  %v1696_v26 = vld [vmem:[%s1842_s7 + $0x18] sm:$0xff] }
  0x33   : > { %p1448_p0 = pnand %p1447_p13, %p1608_p6  ;;  %p1453_p4 = por %p1452_p3, %p1451_p2 }
  0x35   : > { %537 = vperm.xlu0 %1415, %v499_v12   ;;  %527 = vperm.xlu1 %1416, %v497_v13   ;;  %p1449_p1 = pneg %p1448_p0 }
  0x37   : > { %p1454_p5 = pnand %p1453_p4, %p1449_p1 }
  0x38   : > { %517 = vperm.xlu2 %1417, %v495_v20  }
  0x3d   : > { %502 = vperm.xlu0 %1415, %v492_v14   ;;  %507 = vperm.xlu1 %1416, %v493_v15  }
  0x40   : > { %685 = vperm.xlu2 %1417, %v671_v23  }
  0x42   : > { %1291 = vmatmul.msk.bf16.gmra.mxu0 %vm570_vm0, %v1351_v16  ;;  %1295 = vmatmul.msk.bf16.gmra.mxu1 %vm570_vm0, %v1351_v16 }
  0x45   : > { %690 = vperm.xlu0 %1415, %v672_v18   ;;  %675 = vperm.xlu1 %1416, %v669_v19  }
  0x48   : > { %680 = vperm.xlu2 %1417, %v670_v24  }
  0x4d   : > { %815 = vperm.xlu1 %1416, %v1674_v21  }
  0x50   : > { %820 = vperm.xlu2 %1417, %v1696_v26  }
  0x52   : > { %1292 = vmatmul.msk.bf16.gmra.mxu0 %vm570_vm0, %v1352_v22  ;;  %1296 = vmatmul.msk.bf16.gmra.mxu1 %vm570_vm0, %v1352_v22 }
  0x62   : > { %1293 = vmatmul.msk.bf16.gmra.mxu0 %vm570_vm0, %v1353_v25  ;;  %1297 = vmatmul.msk.bf16.gmra.mxu1 %vm570_vm0, %v1353_v25 }
  0x8a   : > { %v513_v41 = vpop.permute.xlu2 %512 }
  0x92   : > { %v518_v52 = vpop.permute.xlu2 %517 }
  0x9f   : > { %v523_v39 = vpop.permute.xlu1 %522  ;;  %v533_v40 = vpop.permute.xlu0 %532 }
  0xa7   : > { %v528_v44 = vpop.permute.xlu1 %527  ;;  %v538_v45 = vpop.permute.xlu0 %537 }
  0xaf   : > { %v592_v27 = vpop.f32.mrf.mxu0  ;;  %v621_v28 = vpop.f32.mrf.mxu1 }
  0xb0   : > { %v508_v0 = vpop.permute.xlu1 %507  ;;  %v503_v7 = vpop.permute.xlu0 %502 }
  0xb1   : > { %v593_v16 = vadd.f32 %v592_v27, %v503_v7  ;;  %v622_v18 = vadd.f32 %v621_v28, %v503_v7  ;;  %v1354_v27 = vld [vmem:[%s1838_s3] sm:$0xff]  ;;  %v1355_v28 = vld [vmem:[%s1838_s3 + $0x8] sm:$0xff] }
  0xb3   : > { %v641_v25 = vmax.f32 %v593_v16, 0.0  ;;  %v756_v16 = vld [vmem:[%s1840_s5] sm:$0x3] }
  0xb7   : > { %v594_v29 = vpop.f32.mrf.mxu0  ;;  %v623_v30 = vpop.f32.mrf.mxu1 }
  0xb8   : > { %v595_v10 = vadd.f32 %v594_v29, %v508_v0  ;;  %v624_v13 = vadd.f32 %v623_v30, %v508_v0  ;;  %v642_v29 = vmax.f32 %v622_v18, 0.0 }
  0xba   : > { %v643_v20 = vmax.f32 %v595_v10, 0.0  ;;  %v644_v23 = vmax.f32 %v624_v13, 0.0 }
  0xbc   : > { %v661_v30 = vpack.c.bf16 %v643_v20, %v641_v25 }
  0xbf   : > { %v597_v31 = vpop.f32.mrf.mxu0  ;;  %v626_v32 = vpop.f32.mrf.mxu1 }
  0xc0   : > { %v598_v5 = vadd.f32 %v597_v31, %v513_v41  ;;  %v627_v8 = vadd.f32 %v626_v32, %v513_v41  ;;  %v662_v31 = vpack.c.bf16 %v644_v23, %v642_v29  ;;  %v1495_v32 = vmov 1   ;;  %v901_v41 = vld [vmem:[%s1843_s8] sm:$0xff] }
  0xc1   : > { %1418 = vset.pattern.permute.xlu0 %v1495_v32  ;;  %1420 = vset.pattern.permute.xlu1 %v1495_v32 }
  0xc2   : > { %v645_v17 = vmax.f32 %v598_v5, 0.0  ;;  %v646_v19 = vmax.f32 %v627_v8, 0.0  ;;  %842 = vperm.xlu0 %1418, %v1674_v21   ;;  %846 = vperm.xlu1 %1420, %v1696_v26  }
  0xc7   : > { %v599_v33 = vpop.f32.mrf.mxu0  ;;  %v628_v34 = vpop.f32.mrf.mxu1 }
  0xc8   : > { %v600_v61 = vadd.f32 %v599_v33, %v518_v52  ;;  %v629_v1 = vadd.f32 %v628_v34, %v518_v52  ;;  %v761_v33 = vld [vmem:[%s1841_s6] sm:$0x7]  ;;  %v800_v34 = vld [vmem:[%s1842_s7 + $0x8] sm:$0xff] }
  0xca   : > { %v647_v11 = vmax.f32 %v600_v61, 0.0  ;;  %v648_v14 = vmax.f32 %v629_v1, 0.0  ;;  %1419 = vset.pattern.permute.xlu0 %v1494_v3 }
  0xcb   : > { %764 = vperm.xlu0 %1419, %v761_v33  }
  0xcc   : > { %v663_v22 = vpack.c.bf16 %v647_v11, %v645_v17  ;;  %v664_v24 = vpack.c.bf16 %v648_v14, %v646_v19  ;;  %v1118_v14 = vld [vmem:[%s1847_s12 + $0x8] sm:$0xff] }
  0xcd   : > { %v954_v17 = vld [vmem:[%s1845_s10 + $0x8] sm:$0xff] }
  0xcf   : > { %v602_v35 = vpop.f32.mrf.mxu0  ;;  %v631_v36 = vpop.f32.mrf.mxu1 }
  0xd0   : > { %v603_v55 = vadd.f32 %v602_v35, %v523_v39  ;;  %v632_v58 = vadd.f32 %v631_v36, %v523_v39  ;;  %v1496_v35 = vmov 2   ;;  %v903_v36 = vld [vmem:[%s1843_s8 + $0x10] sm:$0xff]  ;;  %v956_v39 = vld [vmem:[%s1845_s10 + $0x18] sm:$0xff] }
  0xd1   : > { %1422 = vset.pattern.permute.xlu1 %v1496_v35  ;;  %1421 = vset.pattern.permute.xlu2 %v1496_v35 }
  0xd2   : > { %v649_v6 = vmax.f32 %v603_v55, 0.0  ;;  %v650_v9 = vmax.f32 %v632_v58, 0.0  ;;  %880 = vperm.xlu1 %1422, %v1696_v26   ;;  %876 = vperm.xlu2 %1421, %v1674_v21   ;;  %v902_v26 = vld [vmem:[%s1843_s8 + $0x8] sm:$0xff]  ;;  %v957_v21 = vld [vmem:[%s1845_s10 + $0x20] sm:$0xff] }
  0xd3   : > { %810 = vperm.xlu0 %1419, %v800_v34  }
  0xd7   : > { %v604_v37 = vpop.f32.mrf.mxu0  ;;  %v633_v38 = vpop.f32.mrf.mxu1 }
  0xd8   : > { %v605_v49 = vadd.f32 %v604_v37, %v528_v44  ;;  %v634_v53 = vadd.f32 %v633_v38, %v528_v44  ;;  %v799_v37 = vld [vmem:[%s1842_s7] sm:$0xff]  ;;  %v904_v38 = vld [vmem:[%s1843_s8 + $0x18] sm:$0xff] }
  0xd9   : > { %v1117_v44 = vld [vmem:[%s1847_s12] sm:$0xff] }
  0xda   : > { %v651_v62 = vmax.f32 %v605_v49, 0.0  ;;  %v652_v2 = vmax.f32 %v634_v53, 0.0  ;;  %1424 = vset.pattern.permute.xlu1 %v1495_v32  ;;  %1423 = vset.pattern.permute.xlu2 %v1494_v3  ;;  %v960_v49 = vld [vmem:[%s1845_s10 + $0x38] sm:$0xff] }
  0xdb   : > { %917 = vperm.xlu0 %1419, %v903_v36   ;;  %834 = vperm.xlu1 %1424, %v799_v37  }
  0xdc   : > { %v665_v12 = vpack.c.bf16 %v651_v62, %v649_v6  ;;  %v666_v15 = vpack.c.bf16 %v652_v2, %v650_v9  ;;  %805 = vperm.xlu2 %1423, %v799_v37   ;;  %v955_v2 = vld [vmem:[%s1845_s10 + $0x10] sm:$0xff] }
  0xdf   : > { %v607_v42 = vpop.f32.mrf.mxu0  ;;  %v636_v43 = vpop.f32.mrf.mxu1 }
  0xe0   : > { %v608_v46 = vadd.f32 %v607_v42, %v533_v40  ;;  %v637_v47 = vadd.f32 %v636_v43, %v533_v40  ;;  %v959_v40 = vld [vmem:[%s1845_s10 + $0x30] sm:$0xff] }
  0xe2   : > { %v653_v56 = vmax.f32 %v608_v46, 0.0  ;;  %v654_v59 = vmax.f32 %v637_v47, 0.0 }
  0xe3   : > { %912 = vperm.xlu0 %1419, %v902_v26   ;;  %1426 = vset.pattern.permute.xlu1 %v1496_v35 }
  0xe4   : > { %868 = vperm.xlu1 %1426, %v799_v37   ;;  %1425 = vset.pattern.permute.xlu2 %v1495_v32 }
  0xe5   : > { %838 = vperm.xlu2 %1425, %v800_v34  }
  0xe7   : > { %v609_v48 = vpop.f32.mrf.mxu0  ;;  %v638_v51 = vpop.f32.mrf.mxu1 }
  0xe8   : > { %v610_v50 = vadd.f32 %v609_v48, %v538_v45  ;;  %v639_v54 = vadd.f32 %v638_v51, %v538_v45  ;;  %v686_v45 = vpop.permute.xlu2 %685  ;;  %v958_v48 = vld [vmem:[%s1845_s10 + $0x28] sm:$0xff]  ;;  %v691_v51 = vpop.permute.xlu0 %690 }
  0xea   : > { %v655_v57 = vmax.f32 %v610_v50, 0.0  ;;  %v656_v60 = vmax.f32 %v639_v54, 0.0 }
  0xeb   : > { %983 = vperm.xlu0 %1419, %v957_v21  }
  0xec   : > { %v667_v63 = vpack.c.bf16 %v655_v57, %v653_v56  ;;  %v668_v4 = vpack.c.bf16 %v656_v60, %v654_v59  ;;  %1428 = vset.pattern.permute.xlu1 %v1494_v3  ;;  %v953_v59 = vld [vmem:[%s1845_s10] sm:$0xff]  ;;  %v676_v60 = vpop.permute.xlu1 %675 }
  0xed   : > { %922 = vperm.xlu1 %1428, %v904_v38   ;;  %1427 = vset.pattern.permute.xlu2 %v1496_v35 }
  0xee   : > { %714 = vmatpush.bf16.msrb.mxu0 %v667_v63  ;;  %1362 = vmatpush.bf16.msra.mxu2 %v667_v63 }
  0xef   : > { %733 = vmatpush.bf16.msrb.mxu1 %v668_v4  ;;  %1366 = vmatpush.bf16.msra.mxu3 %v668_v4 }
  0xf0   : > { %872 = vperm.xlu2 %1427, %v800_v34  }
  0xf2   : > { %715 = vmatpush.bf16.msrb.mxu0 %v665_v12  ;;  %1363 = vmatpush.bf16.msra.mxu2 %v665_v12 }
  0xf3   : > { %734 = vmatpush.bf16.msrb.mxu1 %v666_v15  ;;  %1367 = vmatpush.bf16.msra.mxu3 %v666_v15 }
  0xf4   : > { %978 = vperm.xlu0 %1419, %v956_v39   ;;  %v816_v18 = vpop.permute.xlu1 %815 }
  0xf5   : > { %993 = vperm.xlu1 %1428, %v959_v40  }
  0xf6   : > { %716 = vmatpush.bf16.msrb.mxu0 %v663_v22  ;;  %1364 = vmatpush.bf16.msra.mxu2 %v663_v22 }
  0xf7   : > { %735 = vmatpush.bf16.msrb.mxu1 %v664_v24  ;;  %1368 = vmatpush.bf16.msra.mxu3 %v664_v24 }
  0xf8   : > { %1429 = vset.pattern.permute.xlu2 %v1494_v3  ;;  %v681_v3 = vpop.permute.xlu2 %680 }
  0xf9   : > { %907 = vperm.xlu2 %1429, %v901_v41  }
  0xfa   : > { %717 = vmatpush.bf16.msrb.mxu0 %v661_v30  ;;  %1365 = vmatpush.bf16.msra.mxu2 %v661_v30 }
  0xfb   : > { %736 = vmatpush.bf16.msrb.mxu1 %v662_v31  ;;  %1369 = vmatpush.bf16.msra.mxu3 %v662_v31 }
  0xfc   : > { %1121 = vperm.xlu0 %1419, %v1117_v44  }
  0xfd   : > { %1306 = vmatmul.msk.bf16.vlgmr.msrb.gmra.mxu0 %vm703_vm1, %v1354_v27  ;;  %1307 = vmatmul.msk.bf16.vlgmr.msra.gmra.mxu2 %vm703_vm1, %v1355_v28 }
  0xfe   : > { %1308 = vmatmul.msk.bf16.vlgmr.msrb.gmra.mxu1 %vm703_vm1, %v1354_v27  ;;  %1309 = vmatmul.msk.bf16.vlgmr.msra.gmra.mxu3 %vm703_vm1, %v1355_v28 }
  0xff   : > { %988 = vperm.xlu1 %1428, %v958_v48  }
 0x100   : > { %v821_v19 = vpop.permute.xlu2 %820 }
 0x101   : > { %998 = vperm.xlu2 %1429, %v960_v49  }
 0x107   : > { %963 = vperm.xlu1 %1428, %v953_v59  }
 0x109   : > { %973 = vperm.xlu2 %1429, %v955_v2  }
 0x10f   : > { %1126 = vperm.xlu1 %1428, %v1118_v14  }
 0x111   : > { %968 = vperm.xlu2 %1429, %v954_v17  }
 0x12c   : > { %v877_v23 = vpop.permute.xlu2 %876 }
 0x134   : > { %v843_v20 = vpop.permute.xlu0 %842  ;;  %v847_v22 = vpop.permute.xlu1 %846 }
 0x136   : > { %v806_v29 = vpop.permute.xlu2 %805 }
 0x13d   : > { %v765_v24 = vpop.permute.xlu0 %764 }
 0x13f   : > { %v839_v27 = vpop.permute.xlu2 %838 }
 0x144   : > { %v881_v25 = vpop.permute.xlu1 %880 }
 0x145   : > { %v811_v30 = vpop.permute.xlu0 %810 }
 0x14d   : > { %v835_v31 = vpop.permute.xlu1 %834  ;;  %v918_v38 = vpop.permute.xlu0 %917 }
 0x156   : > { %v869_v41 = vpop.permute.xlu1 %868 }
 0x15f   : > { %v923_v17 = vpop.permute.xlu1 %922 }
 0x17a   : > { %v719_v42 = vpop.f32.mrf.mxu0 }
 0x17b   : > { %v738_v43 = vpop.f32.mrf.mxu1  ;;  %v720_v63 = vadd.f32 %v719_v42, %v676_v60 }
 0x17c   : > { %v739_v4 = vadd.f32 %v738_v43, %v676_v60  ;;  %v873_v43 = vpop.permute.xlu2 %872 }
 0x17d   : > { %v748_v11 = vmax.f32 %v720_v63, 0.0 }
 0x17e   : > { %v749_v12 = vmax.f32 %v739_v4, 0.0 }
 0x180   : > { %v724_v46 = vpop.f32.mrf.mxu2 }
 0x181   : > { %v743_v47 = vpop.f32.mrf.mxu3  ;;  %v725_v52 = vadd.f32 %v724_v46, %v686_v45 }
 0x182   : > { %v721_v50 = vpop.f32.mrf.mxu0  ;;  %v744_v54 = vadd.f32 %v743_v47, %v686_v45 }
 0x183   : > { %v740_v53 = vpop.f32.mrf.mxu1  ;;  %v722_v56 = vadd.f32 %v721_v50, %v681_v3  ;;  %v752_v0 = vmax.f32 %v725_v52, 0.0 }
 0x184   : > { %v741_v61 = vadd.f32 %v740_v53, %v681_v3  ;;  %v753_v5 = vmax.f32 %v744_v54, 0.0 }
 0x185   : > { %v750_v7 = vmax.f32 %v722_v56, 0.0 }
 0x186   : > { %v751_v9 = vmax.f32 %v741_v61, 0.0 }
 0x187   : > { %v757_v13 = vpack.c.bf16 %v750_v7, %v748_v11 }
 0x188   : > { %v726_v55 = vpop.f32.mrf.mxu2  ;;  %v758_v15 = vpack.c.bf16 %v751_v9, %v749_v12 }
 0x189   : > { %v727_v57 = vadd.f32 %v726_v55, %v691_v51  ;;  %v745_v58 = vpop.f32.mrf.mxu3 }
 0x18a   : > { %v746_v62 = vadd.f32 %v745_v58, %v691_v51 }
 0x18b   : > { %v754_v1 = vmax.f32 %v727_v57, 0.0 }
 0x18c   : > { %v755_v6 = vmax.f32 %v746_v62, 0.0 }
 0x18d   : > { %v759_v8 = vpack.c.bf16 %v754_v1, %v752_v0 }
 0x18e   : > { %v760_v10 = vpack.c.bf16 %v755_v6, %v753_v5 }
 0x18f   : > { %777 = vmatpush.bf16.msrb.mxu2 %v759_v8 }
 0x190   : > { %790 = vmatpush.bf16.msrb.mxu3 %v760_v10 }
 0x193   : > { %778 = vmatpush.bf16.msrb.mxu2 %v757_v13 }
 0x194   : > { %791 = vmatpush.bf16.msrb.mxu3 %v758_v15 }
 0x196   : > { %1310 = vmatmul.msk.bf16.vlgmr.msrb.gmra.mxu2 %vm767_vm2, %v756_v16 }
 0x197   : > { %1311 = vmatmul.msk.bf16.vlgmr.msrb.gmra.mxu3 %vm767_vm2, %v756_v16  ;;  %v913_v16 = vpop.permute.xlu0 %912 }
 0x219   : > { %v780_v28 = vpop.f32.mrf.mxu2 }
 0x21a   : > { %v781_v32 = vadd.f32 %v780_v28, %v765_v24  ;;  %v793_v33 = vpop.f32.mrf.mxu3 }
 0x21b   : > { %v794_v34 = vadd.f32 %v793_v33, %v765_v24 }
 0x21c   : > { %v797_v35 = vmax.f32 %v781_v32, 0.0 }
 0x21d   : > { %v798_v36 = vmax.f32 %v794_v34, 0.0 }
 0x21e   : > { %v823_v37 = vperm.slane %v797_v35, 0  ;;  %v849_v26 = vperm.slane %v797_v35, 1  ;;  %v883_v21 = vperm.slane %v797_v35, 2 }
 0x21f   : > { %v824_v39 = vperm.slane %v798_v36, 0  ;;  %v850_v40 = vperm.slane %v798_v36, 1  ;;  %v884_v42 = vperm.slane %v798_v36, 2 }
 0x220   : > { %v827_v44 = vmul.f32 %v823_v37, %v811_v30  ;;  %v853_v45 = vmul.f32 %v849_v26, %v839_v27  ;;  %v885_v46 = vmul.f32 %v883_v21, %v869_v41  ;;  %v887_v49 = vmul.f32 %v883_v21, %v873_v43 }
 0x221   : > { %v828_v47 = vmul.f32 %v824_v39, %v811_v30  ;;  %v854_v48 = vmul.f32 %v850_v40, %v839_v27  ;;  %v782_v50 = vpop.f32.mrf.mxu2  ;;  %v829_v52 = vmul.f32 %v823_v37, %v816_v18  ;;  %v830_v53 = vmul.f32 %v824_v39, %v816_v18 }
 0x222   : > { %v861_v51 = vadd.f32 %v853_v45, %v827_v44  ;;  %v831_v3 = vmul.f32 %v823_v37, %v821_v19  ;;  %v795_v54 = vpop.f32.mrf.mxu3  ;;  %v832_v56 = vmul.f32 %v824_v39, %v821_v19  ;;  %v855_v57 = vmul.f32 %v849_v26, %v843_v20  ;;  %v1356_v45 = vld [vmem:[%s1844_s9] sm:$0xff] }
 0x223   : > { %v862_v55 = vadd.f32 %v854_v48, %v828_v47  ;;  %v856_v58 = vmul.f32 %v850_v40, %v843_v20  ;;  %v888_v59 = vmul.f32 %v884_v42, %v873_v43  ;;  %v857_v61 = vmul.f32 %v849_v26, %v847_v22  ;;  %v1358_v47 = vld [vmem:[%s1844_s9 + $0x10] sm:$0xff]  ;;  %v1359_v48 = vld [vmem:[%s1844_s9 + $0x18] sm:$0xff] }
 0x224   : > { %v895_v60 = vadd.f32 %v887_v49, %v861_v51  ;;  %v858_v62 = vmul.f32 %v850_v40, %v847_v22  ;;  %v863_v63 = vadd.f32 %v855_v57, %v829_v52  ;;  %v889_v1 = vmul.f32 %v883_v21, %v877_v23 }
 0x225   : > { %v864_v0 = vadd.f32 %v856_v58, %v830_v53  ;;  %v890_v2 = vmul.f32 %v884_v42, %v877_v23  ;;  %v896_v4 = vadd.f32 %v888_v59, %v862_v55  ;;  %v865_v5 = vadd.f32 %v857_v61, %v831_v3  ;;  %v994_v61 = vpop.permute.xlu1 %993 }
 0x226   : > { %v866_v6 = vadd.f32 %v858_v62, %v832_v56  ;;  %v891_v7 = vmul.f32 %v883_v21, %v881_v25  ;;  %v886_v8 = vmul.f32 %v884_v42, %v869_v41  ;;  %v892_v9 = vmul.f32 %v884_v42, %v881_v25 }
 0x227   : > { %v897_v10 = vadd.f32 %v889_v1, %v863_v63  ;;  %v898_v11 = vadd.f32 %v890_v2, %v864_v0  ;;  %v825_v13 = vmul.f32 %v823_v37, %v806_v29  ;;  %v826_v14 = vmul.f32 %v824_v39, %v806_v29  ;;  %v908_v37 = vpop.permute.xlu2 %907  ;;  %v984_v0 = vpop.permute.xlu0 %983 }
 0x228   : > { %v899_v12 = vadd.f32 %v891_v7, %v865_v5  ;;  %v851_v15 = vmul.f32 %v849_v26, %v835_v31  ;;  %v900_v18 = vadd.f32 %v892_v9, %v866_v6  ;;  %v852_v22 = vmul.f32 %v850_v40, %v835_v31 }
 0x229   : > { %v929_v19 = vadd.f32 %v918_v38, %v897_v10  ;;  %v930_v20 = vadd.f32 %v918_v38, %v898_v11  ;;  %v927_v24 = vadd.f32 %v913_v16, %v895_v60  ;;  %v928_v23 = vadd.f32 %v913_v16, %v896_v4 }
 0x22a   : > { %v931_v30 = vadd.f32 %v923_v17, %v899_v12  ;;  %v859_v27 = vadd.f32 %v851_v15, %v825_v13  ;;  %v932_v28 = vadd.f32 %v923_v17, %v900_v18  ;;  %v860_v25 = vadd.f32 %v852_v22, %v826_v14 }
 0x22b   : > { %v937_v32 = vmax.f32 %v929_v19, 0.0  ;;  %v938_v33 = vmax.f32 %v930_v20, 0.0  ;;  %v935_v39 = vmax.f32 %v927_v24, 0.0  ;;  %v936_v38 = vmax.f32 %v928_v23, 0.0 }
 0x22c   : > { %v939_v34 = vmax.f32 %v931_v30, 0.0  ;;  %v893_v35 = vadd.f32 %v885_v46, %v859_v27  ;;  %v940_v36 = vmax.f32 %v932_v28, 0.0  ;;  %v894_v29 = vadd.f32 %v886_v8, %v860_v25  ;;  %v1357_v46 = vld [vmem:[%s1844_s9 + $0x8] sm:$0xff] }
 0x22d   : > { %v989_v4 = vpop.permute.xlu1 %988 }
 0x22e   : > { %v951_v26 = vpack.c.bf16 %v939_v34, %v937_v32  ;;  %v925_v21 = vadd.f32 %v908_v37, %v893_v35  ;;  %v952_v41 = vpack.c.bf16 %v940_v36, %v938_v33  ;;  %v926_v42 = vadd.f32 %v908_v37, %v894_v29 }
 0x22f   : > { %v999_v60 = vpop.permute.xlu2 %998  ;;  %v979_v15 = vpop.permute.xlu0 %978 }
 0x230   : > { %v933_v31 = vmax.f32 %v925_v21, 0.0  ;;  %1039 = vmatpush.bf16.msra.mxu2 %v951_v26  ;;  %v934_v40 = vmax.f32 %v926_v42, 0.0  ;;  %1068 = vmatpush.bf16.msra.mxu3 %v952_v41 }
 0x232   : > { %v949_v43 = vpack.c.bf16 %v935_v39, %v933_v31  ;;  %v950_v44 = vpack.c.bf16 %v936_v38, %v934_v40 }
 0x234   : > { %1040 = vmatpush.bf16.msra.mxu2 %v949_v43  ;;  %1069 = vmatpush.bf16.msra.mxu3 %v950_v44 }
 0x235   : > { %v964_v37 = vpop.permute.xlu1 %963 }
 0x237   : > { %1328 = vmatmul.msk.bf16.vlgmr.msra.gmra.mxu2 %vm767_vm2, %v1356_v45  ;;  %1332 = vmatmul.msk.bf16.vlgmr.msra.gmra.mxu3 %vm767_vm2, %v1356_v45  ;;  %v974_v1 = vpop.permute.xlu2 %973 }
 0x23f   : > { %v969_v32 = vpop.permute.xlu2 %968 }
 0x247   : > { %1329 = vmatmul.msk.bf16.gmra.mxu2 %vm767_vm2, %v1357_v46  ;;  %1333 = vmatmul.msk.bf16.gmra.mxu3 %vm767_vm2, %v1357_v46 }
 0x257   : > { %1330 = vmatmul.msk.bf16.gmra.mxu2 %vm767_vm2, %v1358_v47  ;;  %1334 = vmatmul.msk.bf16.gmra.mxu3 %vm767_vm2, %v1358_v47 }
 0x267   : > { %1331 = vmatmul.msk.bf16.gmra.mxu2 %vm767_vm2, %v1359_v48  ;;  %1335 = vmatmul.msk.bf16.gmra.mxu3 %vm767_vm2, %v1359_v48 }
 0x2ba   : > { %v1042_v49 = vpop.f32.mrf.mxu2  ;;  %v1071_v50 = vpop.f32.mrf.mxu3 }
 0x2bb   : > { %v1043_v39 = vadd.f32 %v1042_v49, %v964_v37  ;;  %v1072_v42 = vadd.f32 %v1071_v50, %v964_v37  ;;  %v1360_v49 = vld [vmem:[%s1846_s11] sm:$0xff]  ;;  %v1122_v50 = vpop.permute.xlu0 %1121 }
 0x2bd   : > { %v1091_v45 = vmax.f32 %v1043_v39, 0.0  ;;  %v1092_v46 = vmax.f32 %v1072_v42, 0.0 }
 0x2c2   : > { %v1044_v51 = vpop.f32.mrf.mxu2  ;;  %v1073_v52 = vpop.f32.mrf.mxu3 }
 0x2c3   : > { %v1045_v34 = vadd.f32 %v1044_v51, %v969_v32  ;;  %v1074_v29 = vadd.f32 %v1073_v52, %v969_v32 }
 0x2c5   : > { %v1093_v31 = vmax.f32 %v1045_v34, 0.0  ;;  %v1094_v43 = vmax.f32 %v1074_v29, 0.0 }
 0x2c7   : > { %v1109_v47 = vpack.c.bf16 %v1093_v31, %v1091_v45  ;;  %v1110_v48 = vpack.c.bf16 %v1094_v43, %v1092_v46 }
 0x2ca   : > { %v1047_v53 = vpop.f32.mrf.mxu2  ;;  %v1076_v3 = vpop.f32.mrf.mxu3 }
 0x2cb   : > { %v1048_v27 = vadd.f32 %v1047_v53, %v974_v1  ;;  %v1077_v33 = vadd.f32 %v1076_v3, %v974_v1 }
 0x2cd   : > { %v1095_v41 = vmax.f32 %v1048_v27, 0.0  ;;  %v1096_v38 = vmax.f32 %v1077_v33, 0.0 }
 0x2d2   : > { %v1049_v54 = vpop.f32.mrf.mxu2  ;;  %v1078_v55 = vpop.f32.mrf.mxu3 }
 0x2d3   : > { %v1050_v19 = vadd.f32 %v1049_v54, %v979_v15  ;;  %v1079_v24 = vadd.f32 %v1078_v55, %v979_v15 }
 0x2d5   : > { %v1097_v35 = vmax.f32 %v1050_v19, 0.0  ;;  %v1098_v26 = vmax.f32 %v1079_v24, 0.0 }
 0x2d7   : > { %v1111_v40 = vpack.c.bf16 %v1097_v35, %v1095_v41  ;;  %v1112_v44 = vpack.c.bf16 %v1098_v26, %v1096_v38 }
 0x2da   : > { %v1052_v56 = vpop.f32.mrf.mxu2  ;;  %v1081_v57 = vpop.f32.mrf.mxu3 }
 0x2db   : > { %v1053_v12 = vadd.f32 %v1052_v56, %v984_v0  ;;  %v1082_v16 = vadd.f32 %v1081_v57, %v984_v0  ;;  %v1127_v56 = vpop.permute.xlu1 %1126 }
 0x2dd   : > { %v1099_v28 = vmax.f32 %v1053_v12, 0.0  ;;  %v1100_v25 = vmax.f32 %v1082_v16, 0.0 }
 0x2e2   : > { %v1054_v58 = vpop.f32.mrf.mxu2  ;;  %v1083_v59 = vpop.f32.mrf.mxu3 }
 0x2e3   : > { %v1055_v7 = vadd.f32 %v1054_v58, %v989_v4  ;;  %v1084_v10 = vadd.f32 %v1083_v59, %v989_v4 }
 0x2e5   : > { %v1101_v20 = vmax.f32 %v1055_v7, 0.0  ;;  %v1102_v23 = vmax.f32 %v1084_v10, 0.0 }
 0x2e7   : > { %v1113_v36 = vpack.c.bf16 %v1101_v20, %v1099_v28  ;;  %v1114_v21 = vpack.c.bf16 %v1102_v23, %v1100_v25 }
 0x2ea   : > { %v1057_v62 = vpop.f32.mrf.mxu2  ;;  %v1086_v63 = vpop.f32.mrf.mxu3 }
 0x2eb   : > { %v1058_v2 = vadd.f32 %v1057_v62, %v994_v61  ;;  %v1087_v5 = vadd.f32 %v1086_v63, %v994_v61 }
 0x2ed   : > { %v1103_v13 = vmax.f32 %v1058_v2, 0.0  ;;  %v1104_v17 = vmax.f32 %v1087_v5, 0.0 }
 0x2f2   : > { %v1059_v6 = vpop.f32.mrf.mxu2  ;;  %v1088_v9 = vpop.f32.mrf.mxu3 }
 0x2f3   : > { %v1060_v8 = vadd.f32 %v1059_v6, %v999_v60  ;;  %v1089_v11 = vadd.f32 %v1088_v9, %v999_v60 }
 0x2f5   : > { %v1105_v14 = vmax.f32 %v1060_v8, 0.0  ;;  %v1106_v18 = vmax.f32 %v1089_v11, 0.0 }
 0x2f7   : > { %v1115_v22 = vpack.c.bf16 %v1105_v14, %v1103_v13  ;;  %v1116_v30 = vpack.c.bf16 %v1106_v18, %v1104_v17 }
 0x2f9   : > { %1141 = vmatpush.bf16.msra.mxu0 %v1115_v22  ;;  %1155 = vmatpush.bf16.msra.mxu1 %v1116_v30 }
 0x2fd   : > { %1142 = vmatpush.bf16.msra.mxu0 %v1113_v36  ;;  %1156 = vmatpush.bf16.msra.mxu1 %v1114_v21 }
 0x301   : > { %1143 = vmatpush.bf16.msra.mxu0 %v1111_v40  ;;  %1157 = vmatpush.bf16.msra.mxu1 %v1112_v44 }
 0x305   : > { %1144 = vmatpush.bf16.msra.mxu0 %v1109_v47  ;;  %1158 = vmatpush.bf16.msra.mxu1 %v1110_v48 }
 0x308   : > { %1340 = vmatmul.msk.bf16.vlgmr.msra.gmra.mxu0 %vm703_vm1, %v1360_v49  ;;  %1341 = vmatmul.msk.bf16.vlgmr.msra.gmra.mxu1 %vm703_vm1, %v1360_v49 }
 0x385   : > { %v1146_v51 = vpop.f32.mrf.mxu0  ;;  %v1160_v53 = vpop.f32.mrf.mxu1 }
 0x386   : > { %v1147_v52 = vadd.f32 %v1146_v51, %v1122_v50  ;;  %v1161_v3 = vadd.f32 %v1160_v53, %v1122_v50 }
 0x388   : > { %v1165_v54 = vmax.f32 %v1147_v52, 0.0  ;;  %v1166_v55 = vmax.f32 %v1161_v3, 0.0 }
 0x38a   : > { %1169 = vst [vmem:[%s478_s24] sm:$0xff] %v1165_v54 }
 0x38b   : > { %1170 = vst [vmem:[%s478_s24 + $0x8] sm:$0xff] %v1166_v55 }
 0x38d   : > { %v1148_v57 = vpop.f32.mrf.mxu0  ;;  %v1162_v59 = vpop.f32.mrf.mxu1 }
 0x38e   : > { %v1149_v58 = vadd.f32 %v1148_v57, %v1127_v56  ;;  %v1163_v60 = vadd.f32 %v1162_v59, %v1127_v56 }
 0x390   : > { %v1167_v61 = vmax.f32 %v1149_v58, 0.0  ;;  %v1168_v62 = vmax.f32 %v1163_v60, 0.0 }
 0x392   : > { %1171 = vst [vmem:[%s478_s24 + $0x10] sm:$0xff] %v1167_v61 }
 0x393   : > { %1172 = vst [vmem:[%s478_s24 + $0x18] sm:$0xff] %v1168_v62 }
 0x394   : > { %1457 = shalt.err (!%p1454_p5)
}
 0x395   : > { %s1497_s20 = smov 256   ;;  %s1498_s24 = smov 2048  }
 0x396   : > { %s1499_s2 = smov 16  }
 0x397   : > { %1370 = dma.vmem_to_hbm [thread:$0]  (%p1608_p6), %s1187_s15, 512, %s1189_s30, %s1174_s16, %s1497_s20, %s1498_s24, %s1499_s2  }
 0x398 PF: > { %p1376_p7 = scmp.ge.s32.totalorder %s1492_s28, 2  ;;  %s1203_s23 = sand.u32 1, %s1480_s25  }
 0x399   : > { %s1204_s1 = scalar_lea.sflag [#allocation4], %s1203_s23 }
 0x39a   : > { %p1373_p9 = pnand %p1376_p7, %p1612_p8 }
 0x39c   : > { %p1374_p10 = pneg %p1373_p9 }
 0x39e   : > { %1475 = dma.done.wait (%p1374_p10), %s1204_s1, 512  }
 0x39f   : > { %1477 = vsyncadd (%p1374_p10), %s1204_s1, 4294966784  ;;  %s1860_s21 = sld [smem:[#allocation6_spill]]  ;;  %p23_p11 = scmp.ge.s32.totalorder %s1593_s14, 10  }
 0x3a0   : > { %s1861_s25 = smov %s1484_s26  ;;  %s1862_s26 = smov %s1488_s27 }
 0x3a1   : > { %s1864_s28 = smov %s1593_s14  ;;  %25 = sbr.rel (!%p23_p11) target bundleno = 7 (0x7), region = 150 }
 0x3a5   : > { %s1863_s27 = smov %s1860_s21 }
 0x3a6   :  { %1210 = vsyncpa [#allocation4], 1 }
 0x3a7   :  { %1212 = vsyncpa [#allocation4 + $0x1], 1 }

</bundles_post_ra>
